<compile_context>
chip_gen: v7x
topology: tpu7x:2x2x1
jax: 0.10.0
libtpu: 0.0.40
codegen_flags: <defaults>
</compile_context>

<pallas_src>
import math
import functools

import jax
import jax.numpy as jnp
from jax import lax
from jax.experimental import pallas as pl
from jax.experimental.pallas import tpu as pltpu


def _round_up(v, n):
    return ((v + n - 1) // n) * n


def _subcenter_arcface_kernel(x_ref, w_ref, t_ref, out_ref, *,
                              k, s, m, eps, use_target):
    """Computes one (TB, TC) tile of the output logits.

    Grid is (Cp//TC, Bp//TB): class tiles outer, batch tiles inner, so the big
    W block (whose index depends only on the outer axis) stays resident in VMEM
    across the inner batch loop and is DMA'd from HBM once per class tile.

    x_ref  : (TB, Fp)     mxu_dtype  pre-normalized, pre-padded embedding rows
    w_ref  : (k, Fp, TC)  mxu_dtype  pre-normalized sub-center weights
    t_ref  : (TB, 1)      int32      global target class id (-1 for pad rows)
    out_ref: (TB, TC)     out dtype
    """
    x = x_ref[...]
    # cos_theta = max over k sub-centers of (x_n @ w_n[kk]); contraction is
    # F (axis 1 of x) with F (axis 0 of w) -> no transpose, straight to MXU,
    # f32 accumulation.
    dn = (((1,), (0,)), ((), ()))
    cos_theta = None
    for kk in range(k):                                  # k is small & static
        c = lax.dot_general(x, w_ref[kk], dimension_numbers=dn,
                            preferred_element_type=jnp.float32)
        cos_theta = c if cos_theta is None else jnp.maximum(cos_theta, c)

    if not use_target:
        # target is None -> raw cosine projection on the closest centroids
        out_ref[...] = cos_theta.astype(out_ref.dtype)
        return

    cos_m = math.cos(m)
    sin_m = math.sin(m)
    # Non-target columns: cos(acos(clip(c))) == clip(c), so the clip alone is
    # the full-tile work; the margin trig below only touches (TB, 1) values.
    cos_c = jnp.clip(cos_theta, -1.0 + eps, 1.0 - eps)

    tc = out_ref.shape[-1]
    class_ids = pl.program_id(0) * tc + lax.broadcasted_iota(
        jnp.int32, cos_c.shape, 1)
    is_target = class_ids == t_ref[...]                  # (TB, TC) bool

    # Per-row target cosine; -2 fill means "target not in this class tile"
    # (or padded row), in which case is_target is all-False and the margin
    # value is never selected.
    tgt_cos = jnp.max(jnp.where(is_target, cos_c, -2.0), axis=-1,
                      keepdims=True)                     # (TB, 1)
    sin_t = jnp.sqrt(jnp.maximum(1.0 - tgt_cos * tgt_cos, 0.0))
    cos_plus_m = tgt_cos * cos_m - sin_t * sin_m         # cos(theta + m)
    # theta > pi - m  <=>  cos(theta) < cos(pi - m) = -cos(m)  (acos monotone)
    margin_val = jnp.where(tgt_cos >= -cos_m, cos_plus_m, tgt_cos)

    out_ref[...] = (jnp.where(is_target, margin_val, cos_c) * s
                    ).astype(out_ref.dtype)


def subcenter_arcface_forward(x, weight, target=None, *,
                              s=64.0, m=0.5, eps=1e-6,
                              mxu_dtype=jnp.bfloat16,
                              out_dtype=jnp.float32):
    """SubCenterArcFace forward.

    x      : (B, F) embeddings
    weight : (k, F, C) sub-center weights (same layout as the nn.Parameter)
    target : (B,) int class ids or None
    Returns (B, C) logits (or cosine projections if target is None).
    """
    B, F = x.shape
    k, F2, C = weight.shape
    assert F == F2

    # ---- fused pre-pass: L2-normalize -> cast to MXU dtype (one XLA fusion) --
    # F.normalize(eps=1e-12): v * rsqrt(max(sum(v^2), 1e-24))
    x32 = x.astype(jnp.float32)
    x_n = (x32 * lax.rsqrt(jnp.maximum(
        jnp.sum(x32 * x32, axis=1, keepdims=True), 1e-24))).astype(mxu_dtype)
    w32 = weight.astype(jnp.float32)
    w_n = (w32 * lax.rsqrt(jnp.maximum(
        jnp.sum(w32 * w32, axis=1, keepdims=True), 1e-24))).astype(mxu_dtype)

    # ---- tile selection: lane-dense output tiles, VMEM budgeted ------------
    Fp = _round_up(F, 128)
    TB = min(_round_up(B, 8), 512)           # whole batch when it fits
    TC = min(_round_up(C, 128), 512)
    itm = jnp.dtype(mxu_dtype).itemsize
    oitm = jnp.dtype(out_dtype).itemsize

    def vmem_est(tb, tc):
        # double-buffered input/output blocks + slack for f32 intermediates
        return (2 * (tb * Fp * itm + k * Fp * tc * itm + tb * tc * oitm + tb * 4)
                + 2 * tb * tc * 4)

    budget = 24 * 1024 * 1024                # headroom under the 32 MiB limit
    while vmem_est(TB, TC) > budget and (TB > 128 or TC > 128):
        if TC >= TB and TC > 128:
            TC //= 2
        else:
            TB //= 2
        TB = max(TB, 8)
        TC = max(TC, 128)

    Bp = _round_up(B, TB)
    Cp = _round_up(C, TC)

    # ---- pad (skipped entirely when already aligned) ------------------------
    xp = x_n if (Bp, Fp) == (B, F) else jnp.pad(
        x_n, ((0, Bp - B), (0, Fp - F)))
    wp = w_n if (Fp, Cp) == (F, C) else jnp.pad(
        w_n, ((0, 0), (0, Fp - F), (0, Cp - C)))

    use_target = target is not None
    if use_target:
        t2d = jnp.pad(target.astype(jnp.int32).reshape(B, 1),
                      ((0, Bp - B), (0, 0)), constant_values=-1)
    else:
        t2d = jnp.full((Bp, 1), -1, jnp.int32)

    kernel = functools.partial(
        _subcenter_arcface_kernel,
        k=k, s=float(s), m=float(m), eps=float(eps), use_target=use_target)

    n_ctiles = Cp // TC
    cost = pl.CostEstimate(
        flops=2 * k * Bp * Cp * Fp,
        transcendentals=(Bp * n_ctiles) if use_target else 0,   # per-row sqrt
        bytes_accessed=(k * Fp * Cp * itm            # W streamed once
                        + n_ctiles * Bp * Fp * itm   # x re-read per class tile
                        + n_ctiles * Bp * 4          # targets
                        + Bp * Cp * oitm),           # output store
    )

    out = pl.pallas_call(
        kernel,
        out_shape=jax.ShapeDtypeStruct((Bp, Cp), out_dtype),
        grid_spec=pltpu.PrefetchScalarGridSpec(
            num_scalar_prefetch=0,
            grid=(n_ctiles, Bp // TB),               # class outer, batch inner
            in_specs=[
                pl.BlockSpec((TB, Fp), lambda j, i: (i, 0)),
                # W block index depends only on the OUTER axis -> Pallas keeps
                # it resident across the inner batch loop (no re-DMA).
                pl.BlockSpec((k, Fp, TC), lambda j, i: (0, 0, j)),
                # per-row targets: tiny (TB,1) int32 block.
                pl.BlockSpec((TB, 1), lambda j, i: (i, 0)),
            ],
            out_specs=pl.BlockSpec((TB, TC), lambda j, i: (i, j)),
        ),
        compiler_params=pltpu.CompilerParams(
            dimension_semantics=("parallel", "parallel"),
            vmem_limit_bytes=32 * 1024 * 1024,       # safe on v5e/v6e/v7x
        ),
        cost_estimate=cost,
    )(xp, wp, t2d)

    return out[:B, :C]


def _xavier_uniform_3d(key, shape):
    # demo init for a (k, F, C) parameter (matches spirit of xavier_uniform_)
    _, fan_in, fan_out = shape
    bound = math.sqrt(6.0 / (fan_in + fan_out))
    return jax.random.uniform(key, shape, jnp.float32, -bound, bound)


if __name__ == "__main__":
    key = jax.random.PRNGKey(0)
    k_x, k_w, k_t = jax.random.split(key, 3)

    batch = 8
    in_features = 32
    out_features = 10
    num_subcenters = 3
    s_val, m_val, eps_val = 64.0, 0.5, 1e-6

    x = jax.random.normal(k_x, (batch, in_features), dtype=jnp.float32)
    weight = _xavier_uniform_3d(k_w, (num_subcenters, in_features, out_features))
    target = jax.random.randint(k_t, (batch,), 0, out_features, dtype=jnp.int32)

    # With target: margin-adjusted scaled logits
    logits = subcenter_arcface_forward(x, weight, target,
                                       s=s_val, m=m_val, eps=eps_val)
    jax.block_until_ready(logits)

    # Without target: cosine projection on the closest sub-centers
    cosine = subcenter_arcface_forward(x, weight, None,
                                       s=s_val, m=m_val, eps=eps_val)
    jax.block_until_ready(cosine)

    # ---- plain-JAX f32 reference, faithful to the PyTorch module ----
    feats = x / jnp.maximum(
        jnp.sqrt(jnp.sum(x * x, axis=1, keepdims=True)), 1e-12)
    wn = weight / jnp.maximum(
        jnp.sqrt(jnp.sum(weight * weight, axis=1, keepdims=True)), 1e-12)
    cos_all = jnp.einsum("bf,kfc->kbc", feats, wn)
    cos_ref = jnp.max(cos_all, axis=0)
    theta = jnp.arccos(jnp.clip(cos_ref, -1.0 + eps_val, 1.0 - eps_val))
    one_hot = jax.nn.one_hot(target, out_features, dtype=jnp.float32)
    selected = jnp.where(theta > (math.pi - m_val),
                         jnp.zeros_like(one_hot), one_hot)
    logits_ref = jnp.cos(jnp.where(selected > 0.5, theta + m_val, theta)) * s_val

    assert cosine.shape == (batch, out_features)
    assert logits.shape == (batch, out_features)
    # bf16 MXU inputs perturb cosines by ~1e-3 -> relaxed tolerances vs f32 ref.
    assert jnp.allclose(cosine, cos_ref, atol=3e-2), "cosine mismatch"
    assert jnp.allclose(logits / s_val, logits_ref / s_val, atol=3e-2), \
        "logits mismatch"

    print("KERNEL_OK")
</pallas_src>

<mosaic_0001>
module attributes {stable_mosaic.version = 11 : i64} {
  func.func @_subcenter_arcface_kernel(%arg0: i32, %arg1: i32, %arg2: memref<8x128xbf16, #tpu.memory_space<vmem>>, %arg3: memref<3x128x128xbf16, #tpu.memory_space<vmem>>, %arg4: memref<8x1xi32, #tpu.memory_space<vmem>>, %arg5: memref<8x128xf32, #tpu.memory_space<vmem>>) attributes {dimension_semantics = [#tpu.dimension_semantics<parallel>, #tpu.dimension_semantics<parallel>], iteration_bounds = array<i64: 1, 1>, scalar_prefetch = 0 : i64, scratch_operands = 0 : i64, tpu.core_type = #tpu.core_type<tc>, window_params = [{transform_indices = @transform_0, window_bounds = array<i64: 8, 128>}, {transform_indices = @transform_1, window_bounds = array<i64: 3, 128, 128>}, {transform_indices = @transform_2, window_bounds = array<i64: 8, 1>}, {transform_indices = @transform_3, window_bounds = array<i64: 8, 128>}]} {
    %c0 = arith.constant 0 : index
    %c0_0 = arith.constant 0 : index
    %0 = vector.load %arg2[%c0, %c0_0] : memref<8x128xbf16, #tpu.memory_space<vmem>>, vector<8x128xbf16>
    %c0_1 = arith.constant 0 : index
    %c0_2 = arith.constant 0 : index
    %c0_3 = arith.constant 0 : index
    %1 = vector.load %arg3[%c0_1, %c0_2, %c0_3] : memref<3x128x128xbf16, #tpu.memory_space<vmem>>, vector<1x128x128xbf16>
    %2 = vector.shape_cast %1 : vector<1x128x128xbf16> to vector<128x128xbf16>
    %cst = arith.constant dense<0.000000e+00> : vector<8x128xf32>
    %3 = tpu.matmul %0, %2, %cst {dimension_numbers = #tpu.dot_dimension_numbers<[1], [0], [0], [1], [0, 0, 1, 1], [], []>} : vector<8x128xbf16>, vector<128x128xbf16>, vector<8x128xf32> -> vector<8x128xf32>
    %c1 = arith.constant 1 : index
    %c0_4 = arith.constant 0 : index
    %c0_5 = arith.constant 0 : index
    %4 = vector.load %arg3[%c1, %c0_4, %c0_5] : memref<3x128x128xbf16, #tpu.memory_space<vmem>>, vector<1x128x128xbf16>
    %5 = vector.shape_cast %4 : vector<1x128x128xbf16> to vector<128x128xbf16>
    %cst_6 = arith.constant dense<0.000000e+00> : vector<8x128xf32>
    %6 = tpu.matmul %0, %5, %cst_6 {dimension_numbers = #tpu.dot_dimension_numbers<[1], [0], [0], [1], [0, 0, 1, 1], [], []>} : vector<8x128xbf16>, vector<128x128xbf16>, vector<8x128xf32> -> vector<8x128xf32>
    %7 = arith.maximumf %3, %6 : vector<8x128xf32>
    %c2 = arith.constant 2 : index
    %c0_7 = arith.constant 0 : index
    %c0_8 = arith.constant 0 : index
    %8 = vector.load %arg3[%c2, %c0_7, %c0_8] : memref<3x128x128xbf16, #tpu.memory_space<vmem>>, vector<1x128x128xbf16>
    %9 = vector.shape_cast %8 : vector<1x128x128xbf16> to vector<128x128xbf16>
    %cst_9 = arith.constant dense<0.000000e+00> : vector<8x128xf32>
    %10 = tpu.matmul %0, %9, %cst_9 {dimension_numbers = #tpu.dot_dimension_numbers<[1], [0], [0], [1], [0, 0, 1, 1], [], []>} : vector<8x128xbf16>, vector<128x128xbf16>, vector<8x128xf32> -> vector<8x128xf32>
    %11 = arith.maximumf %7, %10 : vector<8x128xf32>
    %cst_10 = arith.constant -0.999998986 : f32
    %cst_11 = arith.constant 0.999998986 : f32
    %12 = vector.broadcast %cst_10 : f32 to vector<8x128xf32>
    %13 = arith.maximumf %12, %11 : vector<8x128xf32>
    %14 = vector.broadcast %cst_11 : f32 to vector<8x128xf32>
    %15 = arith.minimumf %14, %13 : vector<8x128xf32>
    %c128_i32 = arith.constant 128 : i32
    %16 = arith.muli %arg0, %c128_i32 : i32
    %17 = tpu.iota {dimensions = array<i32: 1>} : vector<8x128xi32>
    %18 = vector.broadcast %16 : i32 to vector<8x128xi32>
    %19 = arith.addi %18, %17 : vector<8x128xi32>
    %c0_12 = arith.constant 0 : index
    %c0_13 = arith.constant 0 : index
    %20 = vector.load %arg4[%c0_12, %c0_13] : memref<8x1xi32, #tpu.memory_space<vmem>>, vector<8x1xi32>
    %21 = vector.broadcast %20 : vector<8x1xi32> to vector<8x128xi32>
    %22 = arith.cmpi eq, %19, %21 : vector<8x128xi32>
    %cst_14 = arith.constant -2.000000e+00 : f32
    %23 = vector.broadcast %cst_14 : f32 to vector<8x128xf32>
    %24 = arith.select %22, %15, %23 : vector<8x128xi1>, vector<8x128xf32>
    %cst_15 = arith.constant dense<0xFF800000> : vector<8xf32>
    %25 = vector.multi_reduction <maximumf>, %24, %cst_15 [1] : vector<8x128xf32> to vector<8xf32>
    %26 = vector.shape_cast %25 : vector<8xf32> to vector<8x1xf32>
    %27 = arith.mulf %26, %26 : vector<8x1xf32>
    %cst_16 = arith.constant 1.000000e+00 : f32
    %28 = vector.broadcast %cst_16 : f32 to vector<8x1xf32>
    %29 = arith.subf %28, %27 : vector<8x1xf32>
    %cst_17 = arith.constant 0.000000e+00 : f32
    %30 = vector.broadcast %cst_17 : f32 to vector<8x1xf32>
    %31 = arith.maximumf %29, %30 : vector<8x1xf32>
    %32 = math.sqrt %31 : vector<8x1xf32>
    %cst_18 = arith.constant 0.87758255 : f32
    %33 = vector.broadcast %cst_18 : f32 to vector<8x1xf32>
    %34 = arith.mulf %26, %33 : vector<8x1xf32>
    %cst_19 = arith.constant 0.47942555 : f32
    %35 = vector.broadcast %cst_19 : f32 to vector<8x1xf32>
    %36 = arith.mulf %32, %35 : vector<8x1xf32>
    %37 = arith.subf %34, %36 : vector<8x1xf32>
    %cst_20 = arith.constant -0.87758255 : f32
    %38 = vector.broadcast %cst_20 : f32 to vector<8x1xf32>
    %39 = arith.cmpf oge, %26, %38 : vector<8x1xf32>
    %40 = arith.select %39, %37, %26 : vector<8x1xi1>, vector<8x1xf32>
    %41 = vector.shape_cast %40 : vector<8x1xf32> to vector<8x1xf32>
    %42 = vector.broadcast %41 : vector<8x1xf32> to vector<8x128xf32>
    %43 = arith.select %22, %42, %15 : vector<8x128xi1>, vector<8x128xf32>
    %cst_21 = arith.constant 6.400000e+01 : f32
    %44 = vector.broadcast %cst_21 : f32 to vector<8x128xf32>
    %45 = arith.mulf %43, %44 : vector<8x128xf32>
    %c0_22 = arith.constant 0 : index
    %c0_23 = arith.constant 0 : index
    %46 = vector.load %arg5[%c0_22, %c0_23] : memref<8x128xf32, #tpu.memory_space<vmem>>, vector<8x128xf32>
    tpu.vector_store %arg5[%c0_22, %c0_23], %45 {strides = array<i32>} : memref<8x128xf32, #tpu.memory_space<vmem>>, vector<8x128xf32>,
    return
  }
  func.func @transform_0(%arg0: i32, %arg1: i32) -> (i32, i32) {
    %c0_i32 = arith.constant 0 : i32
    %c0_i32_0 = arith.constant 0 : i32
    return %arg1, %c0_i32 : i32, i32
  }
  func.func @transform_1(%arg0: i32, %arg1: i32) -> (i32, i32, i32) {
    %c0_i32 = arith.constant 0 : i32
    %c0_i32_0 = arith.constant 0 : i32
    %c0_i32_1 = arith.constant 0 : i32
    return %c0_i32, %c0_i32_0, %arg0 : i32, i32, i32
  }
  func.func @transform_2(%arg0: i32, %arg1: i32) -> (i32, i32) {
    %c0_i32 = arith.constant 0 : i32
    %c0_i32_0 = arith.constant 0 : i32
    return %arg1, %c0_i32 : i32, i32
  }
  func.func @transform_3(%arg0: i32, %arg1: i32) -> (i32, i32) {
    %c0_i32 = arith.constant 0 : i32
    return %arg1, %arg0 : i32, i32
  }
}

</mosaic_0001>

<bundles_post_ra>
// kernel: tpu_custom_call.1
= control target key start
LH: loop header
LB: loop body
LE: loop exit
PB: predicated region body
PF: predicated region fallthrough
CT: control target
= control target key end

     0   :  { %8 = vsyncpa [#allocation3], 0  ;;  %s678_s0 = inlined_call_operand.vmem [shape: bf16[8,128], index: 0, kind: input, shape index: {}]   ;;  %s679_s1 = inlined_call_operand.hbm [shape: bf16[3,128,128], index: 1, kind: input, shape index: {}]   ;;  %s680_s2 = inlined_call_operand.vmem [shape: s32[8,1], index: 2, kind: input, shape index: {}]   ;;  %s681_s3 = inlined_call_operand.hbm [shape: f32[8,128], index: 3, kind: output, shape index: {}]  }
   0x1   :  { %9 = vsyncpa [#allocation4], 0  ;;  %s589_s12 = smov [#allocation2]   ;;  %s541_s16 = scalar_lea.hbm %s679_s1, 3072 }
   0x2   :  { %s17_s13 = sshll.u32 %s589_s12, 4  ;;  %p542_p0 = scmp.ne.s32.totalorder %s679_s1, %s541_s16  ;;  %s18_s13 = int_to_ptr.vmem [resolvable:$true] %s17_s13 }
   0x3   :  { %p545_p1 = scmp.lt.u32.totalorder %s541_s16, %s679_s1 }
   0x5   :  { %p547_p2 = pnand %p545_p1, %p542_p0 }
   0x7   :  { %550 = shalt.err (!%p547_p2)
}
   0x8   :  { %s551_s21 = scalar_lea.vmem %s18_s13, 3072  ;;  %p556_p4 = scmp.lt.s32.totalorder %s18_s13, %s18_s13 }
   0x9   :  { %p552_p3 = scmp.ne.s32.totalorder %s18_s13, %s551_s21  ;;  %p557_p5 = scmp.lt.s32.totalorder %s551_s21, %s551_s21 }
   0xb   :  { %p558_p6 = por %p557_p5, %p556_p4 }
   0xd   :  { %p559_p7 = pnand %p558_p6, %p552_p3 }
   0xf   :  { %562 = shalt.err (!%p559_p7)
}
  0x10   :  { %s590_s22 = smov 64   ;;  %s591_s23 = smov 4  }
  0x11   :  { %23 = dma.hbm_to_vmem [thread:$0]  %s679_s1, 3072, %s18_s13, [#allocation3], %s590_s22, %s590_s22, %s591_s23  }
  0x12   :  { %585 = dma.done.wait [#allocation3], 3072  }
  0x13   :  { %586 = vsyncadd [#allocation3], 4294964224  ;;  %v592_v0 = vmov 0.0   ;;  %vm593_vm0 = vmmov 0   ;;  %v594_v1 = vmov 0   ;;  %v515_v2 = vld [vmem:[#allocation2] sm:$0xff]   ;;  %v350_v37 = vlaneseq }
  0x14   :  { %447 = vmatprep.subr.bf16.mxu0 %v592_v0  ;;  %467 = vmatprep.subr.bf16.mxu1 %v592_v0  ;;  %v516_v3 = vld [vmem:[#allocation2 + $0x40] sm:$0xff]   ;;  %v517_v4 = vld [vmem:[#allocation2 + $0x8] sm:$0xff]   ;;  %v519_v6 = vld [vmem:[#allocation2 + $0x10] sm:$0xff]  }
  0x15   :  { %463 = vmatprep.mubr.msk.bf16.mxu0 %vm593_vm0, %v592_v0  ;;  %483 = vmatprep.mubr.msk.bf16.mxu1 %vm593_vm0, %v592_v0  ;;  %v518_v5 = vld [vmem:[#allocation2 + $0x48] sm:$0xff]   ;;  %v520_v7 = vld [vmem:[#allocation2 + $0x50] sm:$0xff]   ;;  %v521_v8 = vld [vmem:[#allocation2 + $0x18] sm:$0xff]   ;;  %v351_v38 = vand.u32 127, %v350_v37 }
  0x16   :  { %514 = vset.pattern.permute.xlu0 %v594_v1  ;;  %448 = vmatpush3.bf16.msra.mxu0 %v515_v2  ;;  %v522_v9 = vld [vmem:[#allocation2 + $0x58] sm:$0xff]   ;;  %v523_v10 = vld [vmem:[#allocation2 + $0x20] sm:$0xff]   ;;  %v525_v12 = vld [vmem:[#allocation2 + $0x28] sm:$0xff]  }
  0x17   :  { %468 = vmatpush3.bf16.msra.mxu1 %v516_v3  ;;  %449 = vmatprep.subr.bf16.mxu0 %v592_v0  ;;  %v524_v11 = vld [vmem:[#allocation2 + $0x60] sm:$0xff]   ;;  %v526_v13 = vld [vmem:[#allocation2 + $0x68] sm:$0xff]   ;;  %v527_v14 = vld [vmem:[#allocation2 + $0x30] sm:$0xff]  }
  0x18   :  { %469 = vmatprep.subr.bf16.mxu1 %v592_v0  ;;  %v528_v15 = vld [vmem:[#allocation2 + $0x70] sm:$0xff]   ;;  %v354_v16 = vld [vmem:[%s680_s2] sm:$0xff]  ;;  %v529_v17 = vld [vmem:[#allocation2 + $0x38] sm:$0xff]  }
  0x19   :  { %356 = vperm.xlu0 %514, %v354_v16   ;;  %v530_v18 = vld [vmem:[#allocation2 + $0x78] sm:$0xff]   ;;  %v30_v19 = vld [vmem:[%s678_s0] sm:$0xf]  ;;  %v532_v21 = vld [vmem:[#allocation2 + $0x88] sm:$0xff]   ;;  %s595_s0 = smov [#allocation5]  }
  0x1a   :  { %450 = vmatpush3.bf16.msra.mxu0 %v517_v4  ;;  %v531_v20 = vld [vmem:[#allocation2 + $0x80] sm:$0xff]   ;;  %v533_v22 = vld [vmem:[#allocation2 + $0x90] sm:$0xff]   ;;  %v534_v23 = vld [vmem:[#allocation2 + $0x98] sm:$0xff]   ;;  %s386_s2 = sshll.u32 %s595_s0, 4  ;;  %s387_s2 = int_to_ptr.vmem [resolvable:$true] %s386_s2 }
  0x1b   :  { %470 = vmatpush3.bf16.msra.mxu1 %v518_v5  ;;  %451 = vmatprep.subr.bf16.mxu0 %v592_v0  ;;  %v535_v24 = vld [vmem:[#allocation2 + $0xa0] sm:$0xff]   ;;  %v536_v25 = vld [vmem:[#allocation2 + $0xa8] sm:$0xff]   ;;  %v537_v26 = vld [vmem:[#allocation2 + $0xb0] sm:$0xff]   ;;  %s563_s29 = scalar_lea.vmem %s387_s2, 128  ;;  %p568_p9 = scmp.lt.s32.totalorder %s387_s2, %s387_s2 }
  0x1c   :  { %471 = vmatprep.subr.bf16.mxu1 %v592_v0  ;;  %v538_v27 = vld [vmem:[#allocation2 + $0xb8] sm:$0xff]   ;;  %p564_p8 = scmp.ne.s32.totalorder %s387_s2, %s563_s29  ;;  %p569_p10 = scmp.lt.s32.totalorder %s563_s29, %s563_s29 }
  0x1e   :  { %452 = vmatpush3.bf16.msra.mxu0 %v519_v6  ;;  %p570_p11 = por %p569_p10, %p568_p9 }
  0x1f   :  { %472 = vmatpush3.bf16.msra.mxu1 %v520_v7  ;;  %453 = vmatprep.subr.bf16.mxu0 %v592_v0 }
  0x20   :  { %473 = vmatprep.subr.bf16.mxu1 %v592_v0  ;;  %p571_p12 = pnand %p570_p11, %p564_p8 }
  0x22   :  { %454 = vmatpush3.bf16.msra.mxu0 %v521_v8 }
  0x23   :  { %474 = vmatpush3.bf16.msra.mxu1 %v522_v9  ;;  %455 = vmatprep.subr.bf16.mxu0 %v592_v0 }
  0x24   :  { %475 = vmatprep.subr.bf16.mxu1 %v592_v0 }
  0x26   :  { %456 = vmatpush3.bf16.msra.mxu0 %v523_v10 }
  0x27   :  { %476 = vmatpush3.bf16.msra.mxu1 %v524_v11  ;;  %457 = vmatprep.subr.bf16.mxu0 %v592_v0 }
  0x28   :  { %477 = vmatprep.subr.bf16.mxu1 %v592_v0 }
  0x2a   :  { %458 = vmatpush3.bf16.msra.mxu0 %v525_v12 }
  0x2b   :  { %478 = vmatpush3.bf16.msra.mxu1 %v526_v13  ;;  %459 = vmatprep.subr.bf16.mxu0 %v592_v0 }
  0x2c   :  { %479 = vmatprep.subr.bf16.mxu1 %v592_v0 }
  0x2e   :  { %460 = vmatpush3.bf16.msra.mxu0 %v527_v14 }
  0x2f   :  { %480 = vmatpush3.bf16.msra.mxu1 %v528_v15  ;;  %461 = vmatprep.subr.bf16.mxu0 %v592_v0 }
  0x30   :  { %481 = vmatprep.subr.bf16.mxu1 %v592_v0 }
  0x32   :  { %462 = vmatpush3.bf16.msra.mxu0 %v529_v17 }
  0x33   :  { %482 = vmatpush3.bf16.msra.mxu1 %v530_v18  ;;  %487 = vmatprep.subr.bf16.mxu0 %v592_v0 }
  0x35   :  { %464 = vmatmul.mubr.bf16.vlgmr.msra.gmra.mrb[0].mxu0 %v30_v19 }
  0x36   :  { %484 = vmatmul.mubr.bf16.vlgmr.msra.gmra.mrb[0].mxu1 %v30_v19  ;;  %488 = vmatpush3.bf16.msra.mxu0 %v531_v20 }
  0x37   :  { %489 = vmatprep.subr.bf16.mxu0 %v592_v0  ;;  %503 = vmatprep.mubr.msk.bf16.mxu0 %vm593_vm0, %v592_v0 }
  0x3a   :  { %490 = vmatpush3.bf16.msra.mxu0 %v532_v21 }
  0x3b   :  { %491 = vmatprep.subr.bf16.mxu0 %v592_v0 }
  0x3e   :  { %492 = vmatpush3.bf16.msra.mxu0 %v533_v22 }
  0x3f   :  { %493 = vmatprep.subr.bf16.mxu0 %v592_v0 }
  0x42   :  { %494 = vmatpush3.bf16.msra.mxu0 %v534_v23 }
  0x43   :  { %495 = vmatprep.subr.bf16.mxu0 %v592_v0 }
  0x46   :  { %496 = vmatpush3.bf16.msra.mxu0 %v535_v24 }
  0x47   :  { %497 = vmatprep.subr.bf16.mxu0 %v592_v0 }
  0x4a   :  { %498 = vmatpush3.bf16.msra.mxu0 %v536_v25 }
  0x4b   :  { %499 = vmatprep.subr.bf16.mxu0 %v592_v0 }
  0x4e   :  { %500 = vmatpush3.bf16.msra.mxu0 %v537_v26 }
  0x4f   :  { %501 = vmatprep.subr.bf16.mxu0 %v592_v0 }
  0x52   :  { %502 = vmatpush3.bf16.msra.mxu0 %v538_v27 }
  0x55   :  { %504 = vmatmul.mubr.bf16.vlgmr.msra.gmra.mrb[4].mxu0 %v30_v19 }
  0x98   :  { %v357_v39 = vpop.permute.xlu0 %356 }
  0x99   :  { %vm358_vm1 = vcmp.eq.s32.totalorder %v351_v38, %v357_v39 }
 0x108   :  { %v129_v28 = vpop.f32.mrb[0].mxu0 }
 0x109   :  { %v465_v29 = vpop.f32.mrb[1].mxu0  ;;  %v234_v30 = vpop.f32.mrb[0].mxu1 }
 0x10a   :  { %v240_v31 = vmax.f32 %v129_v28, %v234_v30  ;;  %v132_v32 = vpop.f32.mrb[2].mxu0  ;;  %v485_v33 = vpop.f32.mrb[1].mxu1 }
 0x10b   :  { %v466_v34 = vpop.f32.mrb[3].mxu0  ;;  %v237_v35 = vpop.f32.mrb[2].mxu1 }
 0x10c   :  { %v486_v36 = vpop.f32.mrb[3].mxu1 }
 0x128   :  { %v340_v40 = vpop.f32.mrb[4].mxu0 }
 0x129   :  { %v346_v41 = vmax.f32 %v240_v31, %v340_v40  ;;  %v505_v42 = vpop.f32.mrb[5].mxu0 }
 0x12a   :  { %v343_v43 = vpop.f32.mrb[6].mxu0 }
 0x12b   :  { %v419_v44 = vclamps-f32 %v346_v41, 0.999999  ;;  %v506_v45 = vpop.f32.mrb[7].mxu0 }
 0x12d   :  { %v359_v46 = vsel %vm358_vm1, %v419_v44, -2.0 }
 0x12e   :  { %360 = vmax.xlane.f32.xlu0 %v359_v46 }
 0x1bb   :  { %v361_v47 = vpop.xlane.xlu0 %360 }
 0x1bc   :  { %v362_v48 = vmul.f32 %v361_v47, %v361_v47  ;;  %v372_v56 = vmul.f32 0.87758255, %v361_v47  ;;  %vm375_vm4 = vcmp.ge.f32.partialorder %v361_v47, -0.87758255 }
 0x1be   :  { %v363_v49 = vsub.f32 1.0, %v362_v48 }
 0x1c0   :  { %v364_v50 = vmax.f32 %v363_v49, 0.0 }
 0x1c2   :  { %539 = vrsqrt.f32 %v364_v50  ;;  %vm367_vm2 = vcmp.eq.f32.partialorder %v364_v50, inf  ;;  %v370_v53 = vand.u32 2147483648, %v364_v50  ;;  %vm369_vm3 = vcmp.eq.f32.partialorder %v364_v50, 0.0 }
 0x1cc   :  { %v540_v51 = vpop.eup %539 }
 0x1cd   :  { %v366_v52 = vmul.f32 %v540_v51, %v364_v50 }
 0x1cf   :  { %v368_v54 = vsel %vm367_vm2, %v364_v50, %v366_v52 }
 0x1d0   :  { %v371_v55 = vsel %vm369_vm3, %v370_v53, %v368_v54 }
 0x1d1   :  { %v373_v57 = vmul.f32 0.47942555, %v371_v55 }
 0x1d3   :  { %v374_v58 = vsub.f32 %v372_v56, %v373_v57 }
 0x1d5   :  { %v376_v59 = vsel %vm375_vm4, %v374_v58, %v361_v47 }
 0x1d6   :  { %v377_v60 = vsel %vm358_vm1, %v376_v59, %v419_v44 }
 0x1d7   :  { %v378_v61 = vmul.f32 64.0, %v377_v60 }
 0x1d9   :  { %379 = vst [vmem:[#allocation5] sm:$0xff] %v378_v61 }
 0x1da   :  { %574 = shalt.err (!%p571_p12)
}
 0x1db   :  { %s575_s5 = scalar_lea.hbm %s681_s3, 128 }
 0x1dc   :  { %p576_p13 = scmp.ne.s32.totalorder %s681_s3, %s575_s5  ;;  %p579_p0 = scmp.lt.u32.totalorder %s575_s5, %s681_s3 }
 0x1de   :  { %p581_p1 = pnand %p579_p0, %p576_p13 }
 0x1e0   :  { %584 = shalt.err (!%p581_p1)
}
 0x1e1   :  { %389 = dma.vmem_to_hbm [thread:$0]  %s387_s2, 128, %s681_s3, [#allocation4]  }
 0x1e2   :  { %587 = dma.done.wait [#allocation4], 128  }
 0x1e3   :  { %588 = vsyncadd [#allocation4], 4294967168 }
 0x1e4   :  { %393 = vsyncpa [#allocation3], 1 }
 0x1e5   :  { %394 = vsyncpa [#allocation4], 1 }

</bundles_post_ra>
